<compile_context>
chip_gen: v6e
topology: v6e:2x2x1
jax: 0.10.0
libtpu: 0.0.40
codegen_flags: <defaults>
</compile_context>

<pallas_src>
import functools

import jax
import jax.numpy as jnp
from jax.experimental import pallas as pl
from jax.experimental.pallas import tpu as pltpu

EPS = 0.01


def _round_up(n, m):
    return ((n + m - 1) // m) * m


def _flowlr_exp_kernel(*refs):
    """refs = (x1_ref, x2_ref, w0t, b0t, w1t, b1t, ..., wft, bft, out_ref).

    Transposed layout: x1_ref (1, TB), x2_ref (dim-1, TB), w_i^T (out, in),
    b_i^T (out, 1), out_ref (1, TB).  Batch is on the lane axis.
    """
    x1_ref, x2_ref = refs[0], refs[1]
    out_ref = refs[-1]
    param_refs = refs[2:-1]

    h = x2_ref[...]                                   # (dim-1, TB) f32
    n_pairs = len(param_refs) // 2
    for li in range(n_pairs):
        wt = param_refs[2 * li][...]                  # (out, in)
        bt = param_refs[2 * li + 1][...]              # (out, 1)
        h = jnp.dot(wt, h, preferred_element_type=jnp.float32) + bt
        if li < n_pairs - 1:                          # ReLU on all but final Linear
            h = jnp.maximum(h, 0.0)

    g = h                                             # (1, TB)
    x1 = x1_ref[...]                                  # (1, TB)
    # bERexp: y1 = x1 * exp(-(eps + g^2))   (exp -> EUP slot)
    out_ref[...] = x1 * jnp.exp(-(EPS + g * g))


@functools.partial(jax.jit, static_argnames=("tile_b",))
def flowlr_forward(x, params, *, tile_b=512):
    """x: (B, dim) f32. params: flat list [W0, b0, ..., Wf, bf] with
    W_i: (in, out), b_i: (1, out) (PyTorch-equivalent layout)."""
    B, dim = x.shape
    x = x.astype(jnp.float32)

    # Batch tile on the lane axis: multiple of 128, capped by the padded batch.
    tile_b = max(128, (tile_b // 128) * 128)
    b_pad = _round_up(B, 128)
    tile_b = min(tile_b, b_pad)
    b_pad = _round_up(b_pad, tile_b)
    n_steps = b_pad // tile_b

    # Transpose to [features, batch] and pad the batch (lane) axis.
    xt = x.T                                          # (dim, B)
    pad = ((0, 0), (0, b_pad - B))
    x1_t = jnp.pad(xt[0:1, :], pad)                   # (1, b_pad)
    x2_t = jnp.pad(xt[1:, :], pad)                    # (dim-1, b_pad)

    # Transpose params once: W^T (out, in), b^T (out, 1).
    params_t = []
    for li in range(len(params) // 2):
        w, b = params[2 * li], params[2 * li + 1]
        params_t += [w.T.astype(jnp.float32), b.T.astype(jnp.float32)]

    x1_spec = pl.BlockSpec((1, tile_b), lambda i: (0, i))
    x2_spec = pl.BlockSpec((dim - 1, tile_b), lambda i: (0, i))
    # Full-array, constant-index blocks: DMA'd once, VMEM-resident across grid.
    param_specs = [pl.BlockSpec(p.shape, lambda i: (0, 0)) for p in params_t]
    out_spec = pl.BlockSpec((1, tile_b), lambda i: (0, i))

    y1_t = pl.pallas_call(
        _flowlr_exp_kernel,
        out_shape=jax.ShapeDtypeStruct((1, b_pad), jnp.float32),
        grid_spec=pltpu.PrefetchScalarGridSpec(
            num_scalar_prefetch=0,
            grid=(n_steps,),
            in_specs=[x1_spec, x2_spec] + param_specs,
            out_specs=out_spec,
        ),
        # y1 row reuses the x1 input buffer; x2 is never written by the kernel.
        input_output_aliases={0: 0},
        compiler_params=pltpu.CompilerParams(
            dimension_semantics=("parallel",)),
    )(x1_t, x2_t, *params_t)

    # Assemble [y1, x2] for API parity with the PyTorch module.  (The x2
    # pass-through is an identity; a fused consumer would read x directly.)
    y1 = y1_t[:, :B].T                                # (B, 1)
    return jnp.concatenate([y1, x[:, 1:]], axis=1)    # (B, dim)


def init_params(key, dim, hidden_dim, num_layers):
    """Deterministic init matching build_relu(dim-1, hidden_dim, num_layers)."""
    in_dim = dim - 1
    layer_dims = [(in_dim, hidden_dim)]
    for _ in range(num_layers):
        layer_dims.append((hidden_dim, hidden_dim))
    layer_dims.append((hidden_dim, 1))

    params = []
    for (fan_in, fan_out) in layer_dims:
        key, kw, kb = jax.random.split(key, 3)
        bound = 1.0 / jnp.sqrt(fan_in)
        w = jax.random.uniform(kw, (fan_in, fan_out), jnp.float32, -bound, bound)
        b = jax.random.uniform(kb, (1, fan_out), jnp.float32, -bound, bound)
        params += [w, b]
    return params


def flowlr_reference(x, params):
    """Pure-JAX reference of bERexp for correctness checking."""
    x1, x2 = x[:, :1], x[:, 1:]
    h = x2
    n_pairs = len(params) // 2
    for li in range(n_pairs):
        h = h @ params[2 * li] + params[2 * li + 1]
        if li < n_pairs - 1:
            h = jnp.maximum(h, 0.0)
    y1 = x1 * jnp.exp(-(EPS + h * h))
    return jnp.concatenate([y1, x2], axis=1)


if __name__ == "__main__":
    # Small shapes consistent with the module: dim=4 features, hidden=32,
    # 2 hidden layers.
    dim, hidden_dim, num_layers = 4, 32, 2

    key = jax.random.PRNGKey(0)
    kx, kx2, kp = jax.random.split(key, 3)
    params = init_params(kp, dim, hidden_dim, num_layers)

    # Case 1: B=256 with tile_b=128 exercises a 2-step grid.
    x = jax.random.normal(kx, (256, dim), dtype=jnp.float32)
    out = jax.block_until_ready(flowlr_forward(x, params, tile_b=128))
    ref = flowlr_reference(x, params)
    assert out.shape == (256, dim)
    assert jnp.allclose(out, ref, atol=1e-5, rtol=1e-4), "mismatch vs reference (B=256)"

    # Case 2: B=200 (not a multiple of 128) exercises the lane-padding path.
    x2_in = jax.random.normal(kx2, (200, dim), dtype=jnp.float32)
    out2 = jax.block_until_ready(flowlr_forward(x2_in, params, tile_b=128))
    ref2 = flowlr_reference(x2_in, params)
    assert out2.shape == (200, dim)
    assert jnp.allclose(out2, ref2, atol=1e-5, rtol=1e-4), "mismatch vs reference (B=200)"

    print("KERNEL_OK")
</pallas_src>

<mosaic_0001>
module attributes {stable_mosaic.version = 11 : i64} {
  func.func @_flowlr_exp_kernel(%arg0: i32, %arg1: memref<1x128xf32, #tpu.memory_space<vmem>>, %arg2: memref<3x128xf32, #tpu.memory_space<vmem>>, %arg3: memref<32x3xf32, #tpu.memory_space<vmem>>, %arg4: memref<32x1xf32, #tpu.memory_space<vmem>>, %arg5: memref<32x32xf32, #tpu.memory_space<vmem>>, %arg6: memref<32x1xf32, #tpu.memory_space<vmem>>, %arg7: memref<32x32xf32, #tpu.memory_space<vmem>>, %arg8: memref<32x1xf32, #tpu.memory_space<vmem>>, %arg9: memref<1x32xf32, #tpu.memory_space<vmem>>, %arg10: memref<1x1xf32, #tpu.memory_space<vmem>>, %arg11: memref<1x128xf32, #tpu.memory_space<vmem>>) attributes {dimension_semantics = [#tpu.dimension_semantics<parallel>], iteration_bounds = array<i64: 2>, scalar_prefetch = 0 : i64, scratch_operands = 0 : i64, tpu.core_type = #tpu.core_type<tc>, window_params = [{transform_indices = @transform_0, window_bounds = array<i64: 1, 128>}, {transform_indices = @transform_1, window_bounds = array<i64: 3, 128>}, {pipeline_mode = #tpu.pipeline_mode<synchronous>, transform_indices = @transform_2, window_bounds = array<i64: 32, 3>}, {pipeline_mode = #tpu.pipeline_mode<synchronous>, transform_indices = @transform_3, window_bounds = array<i64: 32, 1>}, {pipeline_mode = #tpu.pipeline_mode<synchronous>, transform_indices = @transform_4, window_bounds = array<i64: 32, 32>}, {pipeline_mode = #tpu.pipeline_mode<synchronous>, transform_indices = @transform_5, window_bounds = array<i64: 32, 1>}, {pipeline_mode = #tpu.pipeline_mode<synchronous>, transform_indices = @transform_6, window_bounds = array<i64: 32, 32>}, {pipeline_mode = #tpu.pipeline_mode<synchronous>, transform_indices = @transform_7, window_bounds = array<i64: 32, 1>}, {pipeline_mode = #tpu.pipeline_mode<synchronous>, transform_indices = @transform_8, window_bounds = array<i64: 1, 32>}, {pipeline_mode = #tpu.pipeline_mode<synchronous>, transform_indices = @transform_9, window_bounds = array<i64: 1, 1>}, {transform_indices = @transform_10, window_bounds = array<i64: 1, 128>}]} {
    %c0 = arith.constant 0 : index
    %c0_0 = arith.constant 0 : index
    %0 = vector.load %arg2[%c0, %c0_0] : memref<3x128xf32, #tpu.memory_space<vmem>>, vector<3x128xf32>
    %c0_1 = arith.constant 0 : index
    %c0_2 = arith.constant 0 : index
    %1 = vector.load %arg3[%c0_1, %c0_2] : memref<32x3xf32, #tpu.memory_space<vmem>>, vector<32x3xf32>
    %c0_3 = arith.constant 0 : index
    %c0_4 = arith.constant 0 : index
    %2 = vector.load %arg4[%c0_3, %c0_4] : memref<32x1xf32, #tpu.memory_space<vmem>>, vector<32x1xf32>
    %cst = arith.constant dense<0.000000e+00> : vector<32x128xf32>
    %3 = tpu.matmul %1, %0, %cst {dimension_numbers = #tpu.dot_dimension_numbers<[1], [0], [0], [1], [0, 0, 1, 1], [], []>} : vector<32x3xf32>, vector<3x128xf32>, vector<32x128xf32> -> vector<32x128xf32>
    %4 = vector.broadcast %2 : vector<32x1xf32> to vector<32x128xf32>
    %5 = arith.addf %3, %4 : vector<32x128xf32>
    %cst_5 = arith.constant 0.000000e+00 : f32
    %6 = vector.broadcast %cst_5 : f32 to vector<32x128xf32>
    %7 = arith.maximumf %5, %6 : vector<32x128xf32>
    %c0_6 = arith.constant 0 : index
    %c0_7 = arith.constant 0 : index
    %8 = vector.load %arg5[%c0_6, %c0_7] : memref<32x32xf32, #tpu.memory_space<vmem>>, vector<32x32xf32>
    %c0_8 = arith.constant 0 : index
    %c0_9 = arith.constant 0 : index
    %9 = vector.load %arg6[%c0_8, %c0_9] : memref<32x1xf32, #tpu.memory_space<vmem>>, vector<32x1xf32>
    %cst_10 = arith.constant dense<0.000000e+00> : vector<32x128xf32>
    %10 = tpu.matmul %8, %7, %cst_10 {dimension_numbers = #tpu.dot_dimension_numbers<[1], [0], [0], [1], [0, 0, 1, 1], [], []>} : vector<32x32xf32>, vector<32x128xf32>, vector<32x128xf32> -> vector<32x128xf32>
    %11 = vector.broadcast %9 : vector<32x1xf32> to vector<32x128xf32>
    %12 = arith.addf %10, %11 : vector<32x128xf32>
    %cst_11 = arith.constant 0.000000e+00 : f32
    %13 = vector.broadcast %cst_11 : f32 to vector<32x128xf32>
    %14 = arith.maximumf %12, %13 : vector<32x128xf32>
    %c0_12 = arith.constant 0 : index
    %c0_13 = arith.constant 0 : index
    %15 = vector.load %arg7[%c0_12, %c0_13] : memref<32x32xf32, #tpu.memory_space<vmem>>, vector<32x32xf32>
    %c0_14 = arith.constant 0 : index
    %c0_15 = arith.constant 0 : index
    %16 = vector.load %arg8[%c0_14, %c0_15] : memref<32x1xf32, #tpu.memory_space<vmem>>, vector<32x1xf32>
    %cst_16 = arith.constant dense<0.000000e+00> : vector<32x128xf32>
    %17 = tpu.matmul %15, %14, %cst_16 {dimension_numbers = #tpu.dot_dimension_numbers<[1], [0], [0], [1], [0, 0, 1, 1], [], []>} : vector<32x32xf32>, vector<32x128xf32>, vector<32x128xf32> -> vector<32x128xf32>
    %18 = vector.broadcast %16 : vector<32x1xf32> to vector<32x128xf32>
    %19 = arith.addf %17, %18 : vector<32x128xf32>
    %cst_17 = arith.constant 0.000000e+00 : f32
    %20 = vector.broadcast %cst_17 : f32 to vector<32x128xf32>
    %21 = arith.maximumf %19, %20 : vector<32x128xf32>
    %c0_18 = arith.constant 0 : index
    %c0_19 = arith.constant 0 : index
    %22 = vector.load %arg9[%c0_18, %c0_19] : memref<1x32xf32, #tpu.memory_space<vmem>>, vector<1x32xf32>
    %c0_20 = arith.constant 0 : index
    %c0_21 = arith.constant 0 : index
    %23 = vector.load %arg10[%c0_20, %c0_21] : memref<1x1xf32, #tpu.memory_space<vmem>>, vector<1x1xf32>
    %cst_22 = arith.constant dense<0.000000e+00> : vector<1x128xf32>
    %24 = tpu.matmul %22, %21, %cst_22 {dimension_numbers = #tpu.dot_dimension_numbers<[1], [0], [0], [1], [0, 0, 1, 1], [], []>} : vector<1x32xf32>, vector<32x128xf32>, vector<1x128xf32> -> vector<1x128xf32>
    %25 = vector.broadcast %23 : vector<1x1xf32> to vector<1x128xf32>
    %26 = arith.addf %24, %25 : vector<1x128xf32>
    %c0_23 = arith.constant 0 : index
    %c0_24 = arith.constant 0 : index
    %27 = vector.load %arg1[%c0_23, %c0_24] : memref<1x128xf32, #tpu.memory_space<vmem>>, vector<1x128xf32>
    %28 = arith.mulf %26, %26 : vector<1x128xf32>
    %cst_25 = arith.constant 0.00999999977 : f32
    %29 = vector.broadcast %cst_25 : f32 to vector<1x128xf32>
    %30 = arith.addf %29, %28 : vector<1x128xf32>
    %cst_26 = arith.constant 0.000000e+00 : f32
    %31 = vector.broadcast %cst_26 : f32 to vector<1x128xf32>
    %32 = arith.subf %31, %30 : vector<1x128xf32>
    %33 = math.exp %32 : vector<1x128xf32>
    %34 = arith.mulf %27, %33 : vector<1x128xf32>
    %c0_27 = arith.constant 0 : index
    %c0_28 = arith.constant 0 : index
    %35 = vector.load %arg11[%c0_27, %c0_28] : memref<1x128xf32, #tpu.memory_space<vmem>>, vector<1x128xf32>
    tpu.vector_store %arg11[%c0_27, %c0_28], %34 {strides = array<i32>} : memref<1x128xf32, #tpu.memory_space<vmem>>, vector<1x128xf32>,
    return
  }
  func.func @transform_0(%arg0: i32) -> (i32, i32) {
    %c0_i32 = arith.constant 0 : i32
    %c0_i32_0 = arith.constant 0 : i32
    return %c0_i32, %arg0 : i32, i32
  }
  func.func @transform_1(%arg0: i32) -> (i32, i32) {
    %c0_i32 = arith.constant 0 : i32
    %c0_i32_0 = arith.constant 0 : i32
    return %c0_i32, %arg0 : i32, i32
  }
  func.func @transform_2(%arg0: i32) -> (i32, i32) {
    %c0_i32 = arith.constant 0 : i32
    %c0_i32_0 = arith.constant 0 : i32
    %c0_i32_1 = arith.constant 0 : i32
    return %c0_i32, %c0_i32_0 : i32, i32
  }
  func.func @transform_3(%arg0: i32) -> (i32, i32) {
    %c0_i32 = arith.constant 0 : i32
    %c0_i32_0 = arith.constant 0 : i32
    %c0_i32_1 = arith.constant 0 : i32
    return %c0_i32, %c0_i32_0 : i32, i32
  }
  func.func @transform_4(%arg0: i32) -> (i32, i32) {
    %c0_i32 = arith.constant 0 : i32
    %c0_i32_0 = arith.constant 0 : i32
    %c0_i32_1 = arith.constant 0 : i32
    return %c0_i32, %c0_i32_0 : i32, i32
  }
  func.func @transform_5(%arg0: i32) -> (i32, i32) {
    %c0_i32 = arith.constant 0 : i32
    %c0_i32_0 = arith.constant 0 : i32
    %c0_i32_1 = arith.constant 0 : i32
    return %c0_i32, %c0_i32_0 : i32, i32
  }
  func.func @transform_6(%arg0: i32) -> (i32, i32) {
    %c0_i32 = arith.constant 0 : i32
    %c0_i32_0 = arith.constant 0 : i32
    %c0_i32_1 = arith.constant 0 : i32
    return %c0_i32, %c0_i32_0 : i32, i32
  }
  func.func @transform_7(%arg0: i32) -> (i32, i32) {
    %c0_i32 = arith.constant 0 : i32
    %c0_i32_0 = arith.constant 0 : i32
    %c0_i32_1 = arith.constant 0 : i32
    return %c0_i32, %c0_i32_0 : i32, i32
  }
  func.func @transform_8(%arg0: i32) -> (i32, i32) {
    %c0_i32 = arith.constant 0 : i32
    %c0_i32_0 = arith.constant 0 : i32
    %c0_i32_1 = arith.constant 0 : i32
    return %c0_i32, %c0_i32_0 : i32, i32
  }
  func.func @transform_9(%arg0: i32) -> (i32, i32) {
    %c0_i32 = arith.constant 0 : i32
    %c0_i32_0 = arith.constant 0 : i32
    %c0_i32_1 = arith.constant 0 : i32
    return %c0_i32, %c0_i32_0 : i32, i32
  }
  func.func @transform_10(%arg0: i32) -> (i32, i32) {
    %c0_i32 = arith.constant 0 : i32
    %c0_i32_0 = arith.constant 0 : i32
    return %c0_i32, %arg0 : i32, i32
  }
}

</mosaic_0001>

<bundles_post_ra>
// kernel: flowlr_forward.1
= control target key start
LH: loop header
LB: loop body
LE: loop exit
PB: predicated region body
PF: predicated region fallthrough
CT: control target
= control target key end

     0   :  { %s1090_s15 = smov 0   ;;  %s1203_s0 = inlined_call_operand.vmem [shape: f32[1,256], index: 0, kind: input, shape index: {}, may-alias: {0,10}]   ;;  %s1204_s1 = inlined_call_operand.vmem [shape: f32[3,256], index: 1, kind: input, shape index: {}]   ;;  %s1205_s2 = inlined_call_operand.vmem [shape: f32[32,3], index: 2, kind: input, shape index: {}]   ;;  %s1206_s3 = inlined_call_operand.vmem [shape: f32[32,1], index: 3, kind: input, shape index: {}]   ;;  %s1207_s4 = inlined_call_operand.vmem [shape: f32[32,32], index: 4, kind: input, shape index: {}]   ;;  %s1208_s5 = inlined_call_operand.vmem [shape: f32[32,1], index: 5, kind: input, shape index: {}]   ;;  %s1209_s6 = inlined_call_operand.vmem [shape: f32[32,32], index: 6, kind: input, shape index: {}]   ;;  %s1210_s7 = inlined_call_operand.vmem [shape: f32[32,1], index: 7, kind: input, shape index: {}]   ;;  %s1211_s8 = inlined_call_operand.vmem [shape: f32[1,32], index: 8, kind: input, shape index: {}]   ;;  %s1212_s9 = inlined_call_operand.<no memory space> [shape: f32[1,1], index: 9, kind: input, shape index: {}]   ;;  %s1213_s10 = inlined_call_operand.vmem [shape: f32[1,256], index: 10, kind: output, shape index: {}, may-alias: {0,10}]  }
   0x1   :  { %v15_v0 = vstv %s1212_s9 }
   0x2   :  { %16 = vst [vmem:[#allocation2] sm:$0x1] %v15_v0 }
   0x3 LB: > { %s911_s16 = sadd.s32 4294967295, %s1027_s15   ;;  %p915_p0 = scmp.ge.s32.totalorder %s1027_s15, 1  ;;  %s1027_s15 = sphi %s1090_s15, %s22_s15  }
   0x4   : > { %p321_p1 = scmp.lt.s32.totalorder %s1027_s15, 3 }
   0x6   : > { %p322_p2 = pnand %p915_p0, %p321_p1 }
   0x7   : > { %p359_p3 = scmp.lt.s32.totalorder (!%p322_p2), %s911_s16, 1 }
   0x8   : > { %325 = sbr.rel (%p322_p2) target bundleno = 865 (0x361), region = 60 }
   0xd   : > { %v370_v1 = vld [vmem:[%s1205_s2] sm:$0xff]  ;;  %vm398_vm0 = vcmask 23552   ;;  %v377_v2 = vld [vmem:[%s1206_s3 + $0x18] sm:$0xff]  ;;  %s1215_s16 = smov (!%p359_p3, %s911_s16), 1  ;;  %v1029_v3 = vmov 0   ;;  %v375_v4 = vld [vmem:[%s1206_s3 + $0x8] sm:$0xff] }
   0xe   : > { %961 = vmatprep.mubr.msk.f32.mxu0 %vm398_vm0, %v370_v1  ;;  %1017 = vset.pattern.permute.xlu0 %v1029_v3  ;;  %s916_s22 = sshll.u32 %s1215_s16, 2  ;;  %vm411_vm1 = vcmask 1042432   ;;  %v376_v5 = vld [vmem:[%s1206_s3 + $0x10] sm:$0xff]  ;;  %v374_v6 = vld [vmem:[%s1206_s3] sm:$0xff]  ;;  %v371_v8 = vld [vmem:[%s1205_s2 + $0x8] sm:$0xff]  ;;  %vm532_vm2 = vcmask 261120   ;;  %s361_s14 = scalar_lea.vmem %s1203_s0, %s1215_s16 }
   0xf   : > { %1018 = vset.pattern.permute.xlu1 %v1029_v3  ;;  %395 = vperm.xlu0 %1017, %v377_v2   ;;  %s365_s27 = scalar_lea.vmem %s1204_s1, %s916_s22  ;;  %v372_v9 = vld [vmem:[%s1205_s2 + $0x10] sm:$0xff]  ;;  %v511_v10 = vld [vmem:[%s1208_s5 + $0x18] sm:$0xff]  ;;  %v509_v13 = vld [vmem:[%s1208_s5 + $0x8] sm:$0xff]  ;;  %v1030_v60 = vmov 0.0   ;;  %vm1031_vm3 = vmmov 0   ;;  %s368_s9 = scalar_lea.vmem %s1213_s10, %s1215_s16 }
  0x10   : > { %385 = vperm.xlu1 %1018, %v375_v4   ;;  %v369_v7 = vld [vmem:[%s365_s27] sm:$0x7]  ;;  %v510_v11 = vld [vmem:[%s1208_s5 + $0x10] sm:$0xff]  ;;  %v373_v12 = vld [vmem:[%s1205_s2 + $0x18] sm:$0xff] }
  0x11   : > { %959 = vmatprep.subr.msk.mxu0 %vm411_vm1, %v369_v7  ;;  %v508_v14 = vld [vmem:[%s1208_s5] sm:$0xff]  ;;  %v641_v15 = vld [vmem:[%s1210_s7 + $0x18] sm:$0xff]  ;;  %v640_v16 = vld [vmem:[%s1210_s7 + $0x10] sm:$0xff] }
  0x12   : > { %960 = vmatpush3.msk.msra.mxu0 %vm411_vm1, %v369_v7  ;;  %v639_v17 = vld [vmem:[%s1210_s7 + $0x8] sm:$0xff]  ;;  %v638_v18 = vld [vmem:[%s1210_s7] sm:$0xff]  ;;  %v506_v38 = vld [vmem:[%s1207_s4 + $0x10] sm:$0xff] }
  0x13   : > { %390 = vperm.xlu0 %1017, %v376_v5   ;;  %962 = vmatmul.mubr.msk.f32.vlgmr.msra.gmra.mxu0 %vm398_vm0, %v371_v8  ;;  %v764_v19 = vld [vmem:[#allocation2] sm:$0x1]  ;;  %v505_v37 = vld [vmem:[%s1207_s4 + $0x8] sm:$0xff]  ;;  %v507_v39 = vld [vmem:[%s1207_s4 + $0x18] sm:$0xff] }
  0x14   : > { %380 = vperm.xlu1 %1018, %v374_v6   ;;  %964 = vmatprep.mubr.msk.f32.mxu0 %vm398_vm0, %v372_v9  ;;  %v504_v20 = vld [vmem:[%s1207_s4] sm:$0xff]  ;;  %v635_v57 = vld [vmem:[%s1209_s6 + $0x8] sm:$0xff]  ;;  %v636_v58 = vld [vmem:[%s1209_s6 + $0x10] sm:$0xff] }
  0x15   : > { %975 = vmatprep.mubr.msk.f32.mxu1 %vm532_vm2, %v504_v20  ;;  %v634_v40 = vld [vmem:[%s1209_s6] sm:$0xff]  ;;  %v637_v59 = vld [vmem:[%s1209_s6 + $0x18] sm:$0xff] }
  0x17   : > { %529 = vperm.xlu0 %1017, %v511_v10   ;;  %965 = vmatmul.mubr.msk.f32.gmra.mxu0 %vm398_vm0, %v373_v12 }
  0x18   : > { %524 = vperm.xlu1 %1018, %v510_v11   ;;  %989 = vmatprep.mubr.msk.f32.mxu0 %vm532_vm2, %v634_v40 }
  0x1b   : > { %519 = vperm.xlu0 %1017, %v509_v13   ;;  %v763_v13 = vld [vmem:[%s1211_s8] sm:$0x1] }
  0x1c   : > { %514 = vperm.xlu1 %1018, %v508_v14   ;;  %v770_v14 = vlaneseq }
  0x1f   : > { %659 = vperm.xlu0 %1017, %v641_v15   ;;  %v771_v15 = vshrl.u32 %v770_v14, 7 }
  0x20   : > { %654 = vperm.xlu1 %1018, %v640_v16  }
  0x21   : > { %v772_v16 = vsub.s32 0, %v771_v15 }
  0x23   : > { %649 = vperm.xlu0 %1017, %v639_v17  }
  0x24   : > { %644 = vperm.xlu1 %1018, %v638_v18  }
  0x27   : > { %767 = vperm.xlu0 %1017, %v764_v19  }
  0x8a   : > { %v396_v21 = vpop.permute.xlu0 %395 }
  0x8b   : > { %v386_v23 = vpop.permute.xlu1 %385 }
  0x8e   : > { %v391_v27 = vpop.permute.xlu0 %390 }
  0x8f   : > { %v381_v32 = vpop.permute.xlu1 %380 }
  0x92   : > { %v530_v41 = vpop.permute.xlu0 %529 }
  0x93   : > { %v525_v43 = vpop.permute.xlu1 %524 }
  0x96   : > { %v520_v47 = vpop.permute.xlu0 %519 }
  0x97   : > { %v515_v52 = vpop.permute.xlu1 %514 }
  0x9a   : > { %v660_v61 = vpop.permute.xlu0 %659 }
  0x9b   : > { %v655_v63 = vpop.permute.xlu1 %654 }
  0x9e   : > { %v650_v3 = vpop.permute.xlu0 %649 }
  0x9f   : > { %v645_v8 = vpop.permute.xlu1 %644 }
  0xa2   : > { %v768_v17 = vpop.permute.xlu0 %767 }
  0xa3   : > { %v773_v18 = vrot.slane %v768_v17, %v772_v16 }
  0xd3   : > { %v963_v22 = vpop.f32.mrf.mxu0 }
  0xd4   : > { %v487_v29 = vadd.f32 %v963_v22, %v386_v23 }
  0xd5   : > { %v481_v24 = vpop.f32.mrf.mxu0 }
  0xd6   : > { %v482_v33 = vadd.f32 %v481_v24, %v381_v32  ;;  %v501_v35 = vmax.f32 %v487_v29, 0.0 }
  0xd7   : > { %v966_v25 = vpop.f32.mrf.mxu0 }
  0xd8   : > { %v497_v26 = vadd.f32 %v966_v25, %v396_v21  ;;  %v500_v36 = vmax.f32 %v482_v33, 0.0 }
  0xd9   : > { %v491_v28 = vpop.f32.mrf.mxu0 }
  0xda   : > { %v503_v30 = vmax.f32 %v497_v26, 0.0  ;;  %v492_v31 = vadd.f32 %v491_v28, %v391_v27  ;;  %v847_v26 = vld [vmem:[%s361_s14] sm:$0x1] }
  0xdc   : > { %v502_v34 = vmax.f32 %v492_v31, 0.0  ;;  %967 = vmatprep.subr.mxu1 %v503_v30 }
  0xdd   : > { %968 = vmatpush3.msra.mxu1 %v503_v30 }
  0xde   : > { %969 = vmatprep.subr.mxu1 %v502_v34 }
  0xdf   : > { %970 = vmatpush3.msra.mxu1 %v502_v34 }
  0xe0   : > { %971 = vmatprep.subr.mxu1 %v501_v35 }
  0xe1   : > { %972 = vmatpush3.msra.mxu1 %v501_v35 }
  0xe2   : > { %973 = vmatprep.subr.mxu1 %v500_v36 }
  0xe3   : > { %974 = vmatpush3.msra.mxu1 %v500_v36 }
  0xe4   : > { %976 = vmatmul.mubr.msk.f32.vlgmr.msra.gmra.mxu1 %vm532_vm2, %v505_v37  ;;  %995 = vmatprep.subr.mxu1 %v1030_v60 }
  0xe5   : > { %978 = vmatprep.mubr.msk.f32.mxu1 %vm532_vm2, %v506_v38 }
  0xe8   : > { %979 = vmatmul.mubr.msk.f32.gmra.mxu1 %vm532_vm2, %v507_v39 }
  0xe9   : > { %1003 = vmatprep.mubr.msk.f32.mxu1 %vm1031_vm3, %v1030_v60 }
 0x1a4   : > { %v977_v42 = vpop.f32.mrf.mxu1 }
 0x1a5   : > { %v617_v49 = vadd.f32 %v977_v42, %v520_v47 }
 0x1a6   : > { %v611_v44 = vpop.f32.mrf.mxu1 }
 0x1a7   : > { %v612_v53 = vadd.f32 %v611_v44, %v515_v52  ;;  %v631_v55 = vmax.f32 %v617_v49, 0.0 }
 0x1a8   : > { %v980_v45 = vpop.f32.mrf.mxu1 }
 0x1a9   : > { %v627_v46 = vadd.f32 %v980_v45, %v530_v41  ;;  %v630_v56 = vmax.f32 %v612_v53, 0.0 }
 0x1aa   : > { %v621_v48 = vpop.f32.mrf.mxu1 }
 0x1ab   : > { %v633_v50 = vmax.f32 %v627_v46, 0.0  ;;  %v622_v51 = vadd.f32 %v621_v48, %v525_v43 }
 0x1ad   : > { %v632_v54 = vmax.f32 %v622_v51, 0.0  ;;  %981 = vmatprep.subr.mxu0 %v633_v50 }
 0x1ae   : > { %982 = vmatpush3.msra.mxu0 %v633_v50 }
 0x1af   : > { %983 = vmatprep.subr.mxu0 %v632_v54 }
 0x1b0   : > { %984 = vmatpush3.msra.mxu0 %v632_v54 }
 0x1b1   : > { %985 = vmatprep.subr.mxu0 %v631_v55 }
 0x1b2   : > { %986 = vmatpush3.msra.mxu0 %v631_v55 }
 0x1b3   : > { %987 = vmatprep.subr.mxu0 %v630_v56 }
 0x1b4   : > { %988 = vmatpush3.msra.mxu0 %v630_v56 }
 0x1b5   : > { %990 = vmatmul.mubr.msk.f32.vlgmr.msra.gmra.mxu0 %vm532_vm2, %v635_v57 }
 0x1b6   : > { %992 = vmatprep.mubr.msk.f32.mxu0 %vm532_vm2, %v636_v58 }
 0x1b9   : > { %993 = vmatmul.mubr.msk.f32.gmra.mxu0 %vm532_vm2, %v637_v59 }
 0x275   : > { %v991_v62 = vpop.f32.mrf.mxu0 }
 0x276   : > { %v746_v5 = vadd.f32 %v991_v62, %v650_v3 }
 0x277   : > { %v740_v0 = vpop.f32.mrf.mxu0 }
 0x278   : > { %v741_v9 = vadd.f32 %v740_v0, %v645_v8  ;;  %v760_v11 = vmax.f32 %v746_v5, 0.0 }
 0x279   : > { %v994_v1 = vpop.f32.mrf.mxu0 }
 0x27a   : > { %v756_v2 = vadd.f32 %v994_v1, %v660_v61  ;;  %v759_v12 = vmax.f32 %v741_v9, 0.0 }
 0x27b   : > { %v750_v4 = vpop.f32.mrf.mxu0 }
 0x27c   : > { %v762_v6 = vmax.f32 %v756_v2, 0.0  ;;  %v751_v7 = vadd.f32 %v750_v4, %v655_v63 }
 0x27e   : > { %v761_v10 = vmax.f32 %v751_v7, 0.0  ;;  %996 = vmatpush3.msra.mxu1 %v762_v6 }
 0x27f   : > { %997 = vmatprep.subr.mxu1 %v1030_v60 }
 0x280   : > { %998 = vmatpush3.msra.mxu1 %v761_v10 }
 0x281   : > { %999 = vmatprep.subr.mxu1 %v1030_v60 }
 0x282   : > { %1000 = vmatpush3.msra.mxu1 %v760_v11 }
 0x283   : > { %1001 = vmatprep.subr.mxu1 %v1030_v60 }
 0x284   : > { %1002 = vmatpush3.msra.mxu1 %v759_v12 }
 0x285   : > { %1004 = vmatmul.mubr.msk.f32.vlgmr.msra.gmra.mxu1 %vm532_vm2, %v763_v13 }
 0x345   : > { %v843_v19 = vpop.f32.mrf.mxu1 }
 0x346   : > { %v844_v20 = vadd.f32 %v843_v19, %v773_v18 }
 0x347   : > { %v1005_v21 = vpop.f32.mrf.mxu1 }
 0x348   : > { %v848_v22 = vmul.f32 %v844_v20, %v844_v20 }
 0x34a   : > { %v849_v23 = vadd.f32 0.01, %v848_v22 }
 0x34c   : > { %v850_v24 = vsub.f32 0.0, %v849_v23 }
 0x34e   : > { %v851_v25 = vmul.f32 1.442695, %v850_v24 }
 0x350   : > { %1019 = vpow2.f32 %v851_v25 }
 0x35d   : > { %v1020_v27 = vpop.eup %1019 }
 0x35e   : > { %v853_v28 = vmul.f32 %v1020_v27, %v847_v26 }
 0x360   : > { %854 = vst [vmem:[%s368_s9] sm:$0x1] %v853_v28 }
 0x361 PF: > { %s22_s15 = sadd.s32 1, %s1027_s15  }
 0x362   : > { %p19_p4 = scmp.ge.s32.totalorder %s22_s15, 4  }
 0x364   :  { %21 = sbr.rel (!%p19_p4) target bundleno = 3 (0x3), region = 93 }

</bundles_post_ra>
